<compile_context>
chip_gen: v7x
topology: tpu7x:2x2x1
jax: 0.10.0
libtpu: 0.0.40
codegen_flags: <defaults>
</compile_context>

<pallas_src>
import jax
import jax.numpy as jnp
from jax.experimental import pallas as pl
from jax.experimental.pallas import tpu as pltpu

SUBLANE = 8
LANE = 128


def _round_up(x, m):
    return ((x + m - 1) // m) * m


def _make_kernel(out_dim, num_layers):
    """Fused MLP on one (features, tb) tile. All dots accumulate in f32."""

    def kernel(xt_ref, w1t_ref, wstk_ref, b_ref, ot_ref):
        # layer 1: (F, in_dim) @ (in_dim, tb) -> (F, tb)
        h = jnp.dot(w1t_ref[...], xt_ref[...].astype(w1t_ref.dtype),
                    preferred_element_type=jnp.float32)
        h = jnp.maximum(h + b_ref[0], 0.0)                      # f32 bias + ReLU
        # hidden layers 2 .. num_layers-1
        for l in range(1, num_layers - 1):
            h = jnp.dot(wstk_ref[l - 1], h.astype(wstk_ref.dtype),
                        preferred_element_type=jnp.float32)
            h = jnp.maximum(h + b_ref[l], 0.0)
        # output layer: linear, no activation
        out = jnp.dot(wstk_ref[num_layers - 2], h.astype(wstk_ref.dtype),
                      preferred_element_type=jnp.float32)
        out = out + b_ref[num_layers - 1]
        # store only the real Q-value rows (sublane-masked, lane-dense store)
        ot_ref[...] = out[:out_dim, :].astype(ot_ref.dtype)

    return kernel


def _pack_params(params, fpad, compute_dtype):
    """Transpose + zero-pad the PyTorch-style tensors into 3 small operands.

    params: list of (W, b) with W as (in_features, out_features), b as (1, out).
    Returns:
      w1t : (fpad, in_dim)           -- layer-1 weight, transposed
      wstk: (L-1, fpad, fpad)        -- layers 2..L weights, transposed+padded
      ball: (L, fpad, 1) f32         -- all biases as sublane column vectors
    """
    num_layers = len(params)
    in_dim = params[0][0].shape[0]

    w1 = params[0][0]
    w1t = jnp.zeros((fpad, in_dim), compute_dtype)
    w1t = w1t.at[: w1.shape[1], :].set(w1.T.astype(compute_dtype))

    stk = []
    for (w, _) in params[1:]:
        wt = jnp.zeros((fpad, fpad), compute_dtype)
        wt = wt.at[: w.shape[1], : w.shape[0]].set(w.T.astype(compute_dtype))
        stk.append(wt)
    wstk = jnp.stack(stk)

    ball = jnp.zeros((num_layers, fpad, 1), jnp.float32)
    for i, (_, b) in enumerate(params):
        ball = ball.at[i, : b.size, 0].set(jnp.asarray(b, jnp.float32).reshape(-1))
    return w1t, wstk, ball


def q_network_forward(x, params, *, block_b=8192, use_bf16=False):
    """x: (B, in_dim) f32. params: list of (W, b), W (in, out), b (1, out)."""
    assert len(params) >= 2
    B, in_dim = x.shape
    num_layers = len(params)
    feat_dims = [w.shape[1] for (w, _) in params]          # [h0, h1, h2, out]
    out_dim = feat_dims[-1]
    fpad = _round_up(max(feat_dims), SUBLANE)
    compute_dtype = jnp.bfloat16 if use_bf16 else jnp.float32

    w1t, wstk, ball = _pack_params(params, fpad, compute_dtype)
    x_t = x.T.astype(compute_dtype)                          # (in_dim, B)

    # --- batch-tile selection ---------------------------------------------
    # Small B: one full-extent tile (legal since block dims equal array dims).
    # Large B: at least 2 lane-aligned tiles so the "parallel" grid axis can
    # shard across v7x's two TensorCores; cap at block_b (multiple of 128).
    block_b = max(LANE, _round_up(block_b, LANE))
    if B <= 2048:
        tb = B
    else:
        tb = min(block_b, _round_up(pl.cdiv(B, 2), LANE))
    grid = (pl.cdiv(B, tb),)

    # Advisory cost estimate (real model dims, not padded).
    dims = [in_dim] + feat_dims
    flops = 2 * B * sum(dims[i] * dims[i + 1] for i in range(len(dims) - 1))
    bytes_accessed = (x_t.size * x_t.dtype.itemsize
                      + w1t.size * w1t.dtype.itemsize
                      + wstk.size * wstk.dtype.itemsize
                      + ball.size * 4
                      + B * out_dim * 4)

    out_t = pl.pallas_call(
        _make_kernel(out_dim, num_layers),
        out_shape=jax.ShapeDtypeStruct((out_dim, B), jnp.float32),
        grid_spec=pl.GridSpec(
            grid=grid,
            in_specs=[
                # streamed per batch tile (batch on the lane axis)
                pl.BlockSpec((in_dim, tb), lambda i: (0, i)),
                # weights / biases: VMEM-resident across all batch tiles
                pl.BlockSpec(w1t.shape, lambda i: (0, 0)),
                pl.BlockSpec(wstk.shape, lambda i: (0, 0, 0)),
                pl.BlockSpec(ball.shape, lambda i: (0, 0, 0)),
            ],
            out_specs=pl.BlockSpec((out_dim, tb), lambda i: (0, i)),
        ),
        compiler_params=pltpu.CompilerParams(
            dimension_semantics=("parallel",),
        ),
        cost_estimate=pl.CostEstimate(
            flops=flops, transcendentals=0, bytes_accessed=bytes_accessed
        ),
    )(x_t, w1t, wstk, ball)

    return out_t.T                                           # (B, out_dim) f32


def init_params(key, in_dim, hidden_list, out_dim):
    """Deterministic init mimicking nn.Linear default (uniform(+-1/sqrt(fan_in)))."""
    dims = [in_dim] + list(hidden_list) + [out_dim]
    params = []
    for i in range(len(dims) - 1):
        fan_in, fan_out = dims[i], dims[i + 1]
        key, kw, kb = jax.random.split(key, 3)
        bound = 1.0 / jnp.sqrt(jnp.float32(fan_in))
        W = jax.random.uniform(kw, (fan_in, fan_out), jnp.float32, -bound, bound)
        b = jax.random.uniform(kb, (1, fan_out), jnp.float32, -bound, bound)
        params.append((W, b))
    return params


def reference_forward(x, params):
    h = x
    for i, (W, b) in enumerate(params):
        h = h @ W + b
        if i < len(params) - 1:
            h = jnp.maximum(h, 0.0)
    return h


if __name__ == "__main__":
    in_dim, out_dim = 4, 2
    hidden_list = [32, 32, 32]

    key = jax.random.PRNGKey(0)
    key, kx = jax.random.split(key)
    params = init_params(key, in_dim, hidden_list, out_dim)

    # Small single-tile case (grid=(1,), block dims equal full extents).
    x_small = jax.random.normal(kx, (8, in_dim), jnp.float32)
    out_small = jax.block_until_ready(q_network_forward(x_small, params))
    ref_small = reference_forward(x_small, params)
    assert out_small.shape == (8, out_dim), out_small.shape
    assert jnp.allclose(out_small, ref_small, atol=1e-4, rtol=1e-4), "mismatch (B=8)"

    # Multi-tile case: B=3000 -> tb=1536, grid=(2,), partial final block.
    # Exercises the "parallel" batch grid (both TCs on v7x) and masked edges.
    key, kx2 = jax.random.split(key)
    x_big = jax.random.normal(kx2, (3000, in_dim), jnp.float32)
    out_big = jax.block_until_ready(q_network_forward(x_big, params))
    ref_big = reference_forward(x_big, params)
    assert out_big.shape == (3000, out_dim), out_big.shape
    assert jnp.allclose(out_big, ref_big, atol=1e-4, rtol=1e-4), "mismatch (B=3000)"

    # Optional bf16-MXU path (f32 accumulation); looser tolerance vs f32 ref.
    out_bf16 = jax.block_until_ready(
        q_network_forward(x_big, params, use_bf16=True))
    assert out_bf16.shape == (3000, out_dim), out_bf16.shape
    assert jnp.allclose(out_bf16, ref_big, atol=5e-2, rtol=5e-2), "mismatch (bf16)"

    print("KERNEL_OK")
</pallas_src>

<mosaic_0001>
module attributes {stable_mosaic.version = 11 : i64} {
  func.func @kernel(%arg0: i32, %arg1: memref<4x8xf32, #tpu.memory_space<vmem>>, %arg2: memref<32x4xf32, #tpu.memory_space<vmem>>, %arg3: memref<3x32x32xf32, #tpu.memory_space<vmem>>, %arg4: memref<4x32x1xf32, #tpu.memory_space<vmem>>, %arg5: memref<2x8xf32, #tpu.memory_space<vmem>>) attributes {dimension_semantics = [#tpu.dimension_semantics<parallel>], iteration_bounds = array<i64: 1>, scalar_prefetch = 0 : i64, scratch_operands = 0 : i64, tpu.core_type = #tpu.core_type<tc>, window_params = [{transform_indices = @transform_0, window_bounds = array<i64: 4, 8>}, {pipeline_mode = #tpu.pipeline_mode<synchronous>, transform_indices = @transform_1, window_bounds = array<i64: 32, 4>}, {pipeline_mode = #tpu.pipeline_mode<synchronous>, transform_indices = @transform_2, window_bounds = array<i64: 3, 32, 32>}, {pipeline_mode = #tpu.pipeline_mode<synchronous>, transform_indices = @transform_3, window_bounds = array<i64: 4, 32, 1>}, {transform_indices = @transform_4, window_bounds = array<i64: 2, 8>}]} {
    %c0 = arith.constant 0 : index
    %c0_0 = arith.constant 0 : index
    %0 = vector.load %arg2[%c0, %c0_0] : memref<32x4xf32, #tpu.memory_space<vmem>>, vector<32x4xf32>
    %c0_1 = arith.constant 0 : index
    %c0_2 = arith.constant 0 : index
    %1 = vector.load %arg1[%c0_1, %c0_2] : memref<4x8xf32, #tpu.memory_space<vmem>>, vector<4x8xf32>
    %cst = arith.constant dense<0.000000e+00> : vector<32x8xf32>
    %2 = tpu.matmul %0, %1, %cst {dimension_numbers = #tpu.dot_dimension_numbers<[1], [0], [0], [1], [0, 0, 1, 1], [], []>} : vector<32x4xf32>, vector<4x8xf32>, vector<32x8xf32> -> vector<32x8xf32>
    %c0_3 = arith.constant 0 : index
    %c0_4 = arith.constant 0 : index
    %c0_5 = arith.constant 0 : index
    %3 = vector.load %arg4[%c0_3, %c0_4, %c0_5] : memref<4x32x1xf32, #tpu.memory_space<vmem>>, vector<1x32x1xf32>
    %4 = vector.shape_cast %3 : vector<1x32x1xf32> to vector<32x1xf32>
    %5 = vector.broadcast %4 : vector<32x1xf32> to vector<32x8xf32>
    %6 = arith.addf %2, %5 : vector<32x8xf32>
    %cst_6 = arith.constant 0.000000e+00 : f32
    %7 = vector.broadcast %cst_6 : f32 to vector<32x8xf32>
    %8 = arith.maximumf %6, %7 : vector<32x8xf32>
    %c0_7 = arith.constant 0 : index
    %c0_8 = arith.constant 0 : index
    %c0_9 = arith.constant 0 : index
    %9 = vector.load %arg3[%c0_7, %c0_8, %c0_9] : memref<3x32x32xf32, #tpu.memory_space<vmem>>, vector<1x32x32xf32>
    %10 = vector.shape_cast %9 : vector<1x32x32xf32> to vector<32x32xf32>
    %cst_10 = arith.constant dense<0.000000e+00> : vector<32x8xf32>
    %11 = tpu.matmul %10, %8, %cst_10 {dimension_numbers = #tpu.dot_dimension_numbers<[1], [0], [0], [1], [0, 0, 1, 1], [], []>} : vector<32x32xf32>, vector<32x8xf32>, vector<32x8xf32> -> vector<32x8xf32>
    %c1 = arith.constant 1 : index
    %c0_11 = arith.constant 0 : index
    %c0_12 = arith.constant 0 : index
    %12 = vector.load %arg4[%c1, %c0_11, %c0_12] : memref<4x32x1xf32, #tpu.memory_space<vmem>>, vector<1x32x1xf32>
    %13 = vector.shape_cast %12 : vector<1x32x1xf32> to vector<32x1xf32>
    %14 = vector.broadcast %13 : vector<32x1xf32> to vector<32x8xf32>
    %15 = arith.addf %11, %14 : vector<32x8xf32>
    %cst_13 = arith.constant 0.000000e+00 : f32
    %16 = vector.broadcast %cst_13 : f32 to vector<32x8xf32>
    %17 = arith.maximumf %15, %16 : vector<32x8xf32>
    %c1_14 = arith.constant 1 : index
    %c0_15 = arith.constant 0 : index
    %c0_16 = arith.constant 0 : index
    %18 = vector.load %arg3[%c1_14, %c0_15, %c0_16] : memref<3x32x32xf32, #tpu.memory_space<vmem>>, vector<1x32x32xf32>
    %19 = vector.shape_cast %18 : vector<1x32x32xf32> to vector<32x32xf32>
    %cst_17 = arith.constant dense<0.000000e+00> : vector<32x8xf32>
    %20 = tpu.matmul %19, %17, %cst_17 {dimension_numbers = #tpu.dot_dimension_numbers<[1], [0], [0], [1], [0, 0, 1, 1], [], []>} : vector<32x32xf32>, vector<32x8xf32>, vector<32x8xf32> -> vector<32x8xf32>
    %c2 = arith.constant 2 : index
    %c0_18 = arith.constant 0 : index
    %c0_19 = arith.constant 0 : index
    %21 = vector.load %arg4[%c2, %c0_18, %c0_19] : memref<4x32x1xf32, #tpu.memory_space<vmem>>, vector<1x32x1xf32>
    %22 = vector.shape_cast %21 : vector<1x32x1xf32> to vector<32x1xf32>
    %23 = vector.broadcast %22 : vector<32x1xf32> to vector<32x8xf32>
    %24 = arith.addf %20, %23 : vector<32x8xf32>
    %cst_20 = arith.constant 0.000000e+00 : f32
    %25 = vector.broadcast %cst_20 : f32 to vector<32x8xf32>
    %26 = arith.maximumf %24, %25 : vector<32x8xf32>
    %c2_21 = arith.constant 2 : index
    %c0_22 = arith.constant 0 : index
    %c0_23 = arith.constant 0 : index
    %27 = vector.load %arg3[%c2_21, %c0_22, %c0_23] : memref<3x32x32xf32, #tpu.memory_space<vmem>>, vector<1x32x32xf32>
    %28 = vector.shape_cast %27 : vector<1x32x32xf32> to vector<32x32xf32>
    %cst_24 = arith.constant dense<0.000000e+00> : vector<32x8xf32>
    %29 = tpu.matmul %28, %26, %cst_24 {dimension_numbers = #tpu.dot_dimension_numbers<[1], [0], [0], [1], [0, 0, 1, 1], [], []>} : vector<32x32xf32>, vector<32x8xf32>, vector<32x8xf32> -> vector<32x8xf32>
    %c3 = arith.constant 3 : index
    %c0_25 = arith.constant 0 : index
    %c0_26 = arith.constant 0 : index
    %30 = vector.load %arg4[%c3, %c0_25, %c0_26] : memref<4x32x1xf32, #tpu.memory_space<vmem>>, vector<1x32x1xf32>
    %31 = vector.shape_cast %30 : vector<1x32x1xf32> to vector<32x1xf32>
    %32 = vector.broadcast %31 : vector<32x1xf32> to vector<32x8xf32>
    %33 = arith.addf %29, %32 : vector<32x8xf32>
    %34 = vector.extract_strided_slice %33 {offsets = [0, 0], sizes = [2, 8], strides = [1, 1]} : vector<32x8xf32> to vector<2x8xf32>
    %c0_27 = arith.constant 0 : index
    %c0_28 = arith.constant 0 : index
    %35 = vector.load %arg5[%c0_27, %c0_28] : memref<2x8xf32, #tpu.memory_space<vmem>>, vector<2x8xf32>
    tpu.vector_store %arg5[%c0_27, %c0_28], %34 {strides = array<i32>} : memref<2x8xf32, #tpu.memory_space<vmem>>, vector<2x8xf32>,
    return
  }
  func.func @transform_0(%arg0: i32) -> (i32, i32) {
    %c0_i32 = arith.constant 0 : i32
    %c0_i32_0 = arith.constant 0 : i32
    return %c0_i32, %arg0 : i32, i32
  }
  func.func @transform_1(%arg0: i32) -> (i32, i32) {
    %c0_i32 = arith.constant 0 : i32
    %c0_i32_0 = arith.constant 0 : i32
    %c0_i32_1 = arith.constant 0 : i32
    return %c0_i32, %c0_i32_0 : i32, i32
  }
  func.func @transform_2(%arg0: i32) -> (i32, i32, i32) {
    %c0_i32 = arith.constant 0 : i32
    %c0_i32_0 = arith.constant 0 : i32
    %c0_i32_1 = arith.constant 0 : i32
    %c0_i32_2 = arith.constant 0 : i32
    return %c0_i32, %c0_i32_0, %c0_i32_1 : i32, i32, i32
  }
  func.func @transform_3(%arg0: i32) -> (i32, i32, i32) {
    %c0_i32 = arith.constant 0 : i32
    %c0_i32_0 = arith.constant 0 : i32
    %c0_i32_1 = arith.constant 0 : i32
    %c0_i32_2 = arith.constant 0 : i32
    return %c0_i32, %c0_i32_0, %c0_i32_1 : i32, i32, i32
  }
  func.func @transform_4(%arg0: i32) -> (i32, i32) {
    %c0_i32 = arith.constant 0 : i32
    %c0_i32_0 = arith.constant 0 : i32
    return %c0_i32, %arg0 : i32, i32
  }
}

</mosaic_0001>

<bundles_post_ra>
// kernel: tpu_custom_call.1
= control target key start
LH: loop header
LB: loop body
LE: loop exit
PB: predicated region body
PF: predicated region fallthrough
CT: control target
= control target key end

     0   :  { %vm60_vm0 = vcmask 1043456   ;;  %vm47_vm1 = vcmask 31744   ;;  %v724_v5 = vmov 0   ;;  %s869_s0 = inlined_call_operand.vmem [shape: f32[4,8], index: 0, kind: input, shape index: {}]   ;;  %s870_s1 = inlined_call_operand.vmem [shape: f32[32,4], index: 1, kind: input, shape index: {}]   ;;  %s871_s2 = inlined_call_operand.vmem [shape: f32[3,32,32], index: 2, kind: input, shape index: {}]   ;;  %s872_s3 = inlined_call_operand.vmem [shape: f32[4,32,1], index: 3, kind: input, shape index: {}]   ;;  %s873_s4 = inlined_call_operand.hbm [shape: f32[2,8], index: 4, kind: output, shape index: {}]  }
   0x1   :  { %v22_v0 = vld [vmem:[%s869_s0] sm:$0xf]  ;;  %v19_v2 = vld [vmem:[%s870_s1 + $0x8] sm:$0xff]  ;;  %v20_v3 = vld [vmem:[%s870_s1 + $0x10] sm:$0xff]  ;;  %698 = vset.pattern.permute.xlu0 %v724_v5  ;;  %699 = vset.pattern.permute.xlu1 %v724_v5 }
   0x2   :  { %v18_v1 = vld [vmem:[%s870_s1] sm:$0xff]  ;;  %618 = vmatprep.subr.msk.mxu0 %vm60_vm0, %v22_v0  ;;  %v25_v6 = vld [vmem:[%s872_s3 + $0x10] sm:$0xff]  ;;  %v21_v7 = vld [vmem:[%s870_s1 + $0x18] sm:$0xff] }
   0x3   :  { %620 = vmatprep.mubr.msk.f32.mxu0 %vm47_vm1, %v18_v1  ;;  %v23_v4 = vld [vmem:[%s872_s3] sm:$0xff]  ;;  %619 = vmatpush3.msk.msra.mxu0 %vm60_vm0, %v22_v0  ;;  %v24_v8 = vld [vmem:[%s872_s3 + $0x8] sm:$0xff]  ;;  %v26_v9 = vld [vmem:[%s872_s3 + $0x18] sm:$0xff] }
   0x4   :  { %621 = vmatmul.mubr.msk.f32.vlgmr.msra.gmra.mrb[0].mxu0 %vm47_vm1, %v19_v2  ;;  %29 = vperm.xlu0 %698, %v23_v4  }
   0x5   :  { %623 = vmatprep.mubr.msk.f32.mxu0 %vm47_vm1, %v20_v3  ;;  %39 = vperm.xlu1 %699, %v25_v6  }
   0x6   :  { %9 = vsyncpa [#allocation3], 0  ;;  %v557_v10 = vld [vmem:[%s872_s3 + $0x20] sm:$0xff]  ;;  %v558_v11 = vld [vmem:[%s872_s3 + $0x28] sm:$0xff]  ;;  %vm182_vm2 = vcmask 261120   ;;  %s725_s18 = smov [#allocation2]  }
   0x7   :  { %v559_v12 = vld [vmem:[%s872_s3 + $0x30] sm:$0xff]  ;;  %v560_v13 = vld [vmem:[%s872_s3 + $0x38] sm:$0xff]  ;;  %v569_v14 = vld [vmem:[%s872_s3 + $0x40] sm:$0xff]  ;;  %s544_s19 = sshll.u32 %s725_s18, 4  ;;  %vm536_vm3 = vcmask 58368   ;;  %s545_s19 = int_to_ptr.vmem [resolvable:$true] %s544_s19 }
   0x8   :  { %624 = vmatmul.mubr.msk.f32.gmra.mrb[2].mxu0 %vm47_vm1, %v21_v7  ;;  %34 = vperm.xlu0 %698, %v24_v8   ;;  %v570_v15 = vld [vmem:[%s872_s3 + $0x48] sm:$0xff]  ;;  %v571_v16 = vld [vmem:[%s872_s3 + $0x50] sm:$0xff]  ;;  %v572_v17 = vld [vmem:[%s872_s3 + $0x58] sm:$0xff]  ;;  %s700_s20 = scalar_lea.vmem %s545_s19, 32  ;;  %p705_p1 = scmp.lt.s32.totalorder %s545_s19, %s545_s19 }
   0x9   :  { %44 = vperm.xlu1 %699, %v26_v9   ;;  %v581_v18 = vld [vmem:[%s872_s3 + $0x60] sm:$0xff]  ;;  %v154_v38 = vld [vmem:[%s871_s2 + $0x8] sm:$0xff]  ;;  %v155_v39 = vld [vmem:[%s871_s2 + $0x10] sm:$0xff]  ;;  %p701_p0 = scmp.ne.s32.totalorder %s545_s19, %s700_s20  ;;  %p706_p2 = scmp.lt.s32.totalorder %s700_s20, %s700_s20 }
   0xa   :  { %v153_v19 = vld [vmem:[%s871_s2] sm:$0xff]  ;;  %v156_v40 = vld [vmem:[%s871_s2 + $0x18] sm:$0xff]  ;;  %v566_v60 = vld [vmem:[%s871_s2 + $0x28] sm:$0xff] }
   0xb   :  { %634 = vmatprep.mubr.msk.f32.mxu1 %vm182_vm2, %v153_v19  ;;  %v565_v41 = vld [vmem:[%s871_s2 + $0x20] sm:$0xff]  ;;  %v567_v61 = vld [vmem:[%s871_s2 + $0x30] sm:$0xff]  ;;  %v568_v62 = vld [vmem:[%s871_s2 + $0x38] sm:$0xff]  ;;  %p707_p3 = por %p706_p2, %p705_p1 }
   0xc   :  { %164 = vperm.xlu0 %698, %v557_v10   ;;  %648 = vmatprep.mubr.msk.f32.mxu0 %vm182_vm2, %v565_v41  ;;  %v577_v63 = vld [vmem:[%s871_s2 + $0x40] sm:$0xff]  ;;  %v579_v0 = vld [vmem:[%s871_s2 + $0x50] sm:$0xff]  ;;  %v578_v19 = vld [vmem:[%s871_s2 + $0x48] sm:$0xff] }
   0xd   :  { %169 = vperm.xlu1 %699, %v558_v11   ;;  %p708_p4 = pnand %p707_p3, %p701_p0 }
  0x10   :  { %174 = vperm.xlu0 %698, %v559_v12  }
  0x11   :  { %179 = vperm.xlu1 %699, %v560_v13  }
  0x14   :  { %296 = vperm.xlu0 %698, %v569_v14  }
  0x15   :  { %301 = vperm.xlu1 %699, %v570_v15  }
  0x18   :  { %306 = vperm.xlu0 %698, %v571_v16  }
  0x19   :  { %311 = vperm.xlu1 %699, %v572_v17  }
  0x1c   :  { %427 = vperm.xlu0 %698, %v581_v18  }
  0x83   :  { %v30_v20 = vpop.permute.xlu0 %29 }
  0x84   :  { %v40_v21 = vpop.permute.xlu1 %39 }
  0x87   :  { %v35_v22 = vpop.permute.xlu0 %34 }
  0x88   :  { %v45_v28 = vpop.permute.xlu1 %44 }
  0x8b   :  { %v165_v43 = vpop.permute.xlu0 %164 }
  0x8c   :  { %v170_v42 = vpop.permute.xlu1 %169 }
  0x8f   :  { %v175_v52 = vpop.permute.xlu0 %174 }
  0x90   :  { %v180_v49 = vpop.permute.xlu1 %179 }
  0x93   :  { %v297_v2 = vpop.permute.xlu0 %296 }
  0x94   :  { %v302_v1 = vpop.permute.xlu1 %301 }
  0x97   :  { %v307_v11 = vpop.permute.xlu0 %306 }
  0x98   :  { %v312_v8 = vpop.permute.xlu1 %311 }
  0xd7   :  { %v622_v23 = vpop.f32.mrb[0].mxu0 }
  0xd8   :  { %v136_v24 = vadd.f32 %v622_v23, %v35_v22  ;;  %v130_v25 = vpop.f32.mrb[1].mxu0 }
  0xd9   :  { %v131_v26 = vadd.f32 %v130_v25, %v30_v20  ;;  %v580_v20 = vld [vmem:[%s871_s2 + $0x58] sm:$0xff] }
  0xda   :  { %v150_v27 = vmax.f32 %v136_v24, 0.0 }
  0xdb   :  { %v149_v29 = vmax.f32 %v131_v26, 0.0  ;;  %v625_v30 = vpop.f32.mrb[2].mxu0 }
  0xdc   :  { %v146_v31 = vadd.f32 %v625_v30, %v45_v28  ;;  %v140_v32 = vpop.f32.mrb[3].mxu0 }
  0xdd   :  { %v141_v33 = vadd.f32 %v140_v32, %v40_v21  ;;  %v668_v34 = vpack.c.bf16 %v150_v27, %v149_v29  ;;  %v428_v21 = vpop.permute.xlu0 %427 }
  0xde   :  { %v152_v35 = vmax.f32 %v146_v31, 0.0 }
  0xdf   :  { %v151_v36 = vmax.f32 %v141_v33, 0.0  ;;  %669 = vmatprep.subr.bf16.mxu1 %v668_v34 }
  0xe0   :  { %671 = vmatpush3.bf16.msra.mxu1 %v668_v34 }
  0xe1   :  { %v672_v37 = vpack.c.bf16 %v152_v35, %v151_v36 }
  0xe3   :  { %673 = vmatprep.subr.bf16.mxu1 %v672_v37 }
  0xe4   :  { %675 = vmatpush3.bf16.msra.mxu1 %v672_v37 }
  0xe7   :  { %635 = vmatmul.mubr.msk.f32.vlgmr.msra.gmra.mrb[0].mxu1 %vm182_vm2, %v154_v38 }
  0xe8   :  { %637 = vmatprep.mubr.msk.f32.mxu1 %vm182_vm2, %v155_v39 }
  0xeb   :  { %638 = vmatmul.mubr.msk.f32.gmra.mrb[2].mxu1 %vm182_vm2, %v156_v40 }
  0xec   :  { %665 = vmatprep.mubr.msk.f32.mxu1 %vm182_vm2, %v579_v0 }
 0x1ba   :  { %v636_v44 = vpop.f32.mrb[0].mxu1 }
 0x1bb   :  { %v267_v45 = vadd.f32 %v636_v44, %v170_v42  ;;  %v261_v46 = vpop.f32.mrb[1].mxu1 }
 0x1bc   :  { %v262_v47 = vadd.f32 %v261_v46, %v165_v43 }
 0x1bd   :  { %v281_v48 = vmax.f32 %v267_v45, 0.0 }
 0x1be   :  { %v280_v50 = vmax.f32 %v262_v47, 0.0  ;;  %v639_v51 = vpop.f32.mrb[2].mxu1 }
 0x1bf   :  { %v277_v53 = vadd.f32 %v639_v51, %v180_v49  ;;  %v271_v54 = vpop.f32.mrb[3].mxu1 }
 0x1c0   :  { %v676_v55 = vpack.c.bf16 %v281_v48, %v280_v50  ;;  %v272_v56 = vadd.f32 %v271_v54, %v175_v52 }
 0x1c1   :  { %v283_v57 = vmax.f32 %v277_v53, 0.0 }
 0x1c2   :  { %v282_v58 = vmax.f32 %v272_v56, 0.0  ;;  %677 = vmatprep.subr.bf16.mxu0 %v676_v55 }
 0x1c3   :  { %679 = vmatpush3.bf16.msra.mxu0 %v676_v55 }
 0x1c4   :  { %v680_v59 = vpack.c.bf16 %v283_v57, %v282_v58 }
 0x1c6   :  { %681 = vmatprep.subr.bf16.mxu0 %v680_v59 }
 0x1c7   :  { %683 = vmatpush3.bf16.msra.mxu0 %v680_v59 }
 0x1ca   :  { %649 = vmatmul.mubr.msk.f32.vlgmr.msra.gmra.mrb[4].mxu0 %vm182_vm2, %v566_v60 }
 0x1cb   :  { %651 = vmatprep.mubr.msk.f32.mxu0 %vm182_vm2, %v567_v61 }
 0x1ce   :  { %652 = vmatmul.mubr.msk.f32.gmra.mrb[6].mxu0 %vm182_vm2, %v568_v62 }
 0x1cf   :  { %662 = vmatprep.mubr.msk.f32.mxu0 %vm182_vm2, %v577_v63 }
 0x29d   :  { %v650_v3 = vpop.f32.mrb[4].mxu0 }
 0x29e   :  { %v398_v4 = vadd.f32 %v650_v3, %v302_v1  ;;  %v392_v5 = vpop.f32.mrb[5].mxu0 }
 0x29f   :  { %v393_v6 = vadd.f32 %v392_v5, %v297_v2 }
 0x2a0   :  { %v412_v7 = vmax.f32 %v398_v4, 0.0 }
 0x2a1   :  { %v411_v9 = vmax.f32 %v393_v6, 0.0  ;;  %v653_v10 = vpop.f32.mrb[6].mxu0 }
 0x2a2   :  { %v408_v12 = vadd.f32 %v653_v10, %v312_v8  ;;  %v402_v13 = vpop.f32.mrb[7].mxu0 }
 0x2a3   :  { %v684_v14 = vpack.c.bf16 %v412_v7, %v411_v9  ;;  %v403_v15 = vadd.f32 %v402_v13, %v307_v11 }
 0x2a4   :  { %v414_v16 = vmax.f32 %v408_v12, 0.0 }
 0x2a5   :  { %v413_v17 = vmax.f32 %v403_v15, 0.0  ;;  %685 = vmatprep.subr.bf16.mxu0 %v684_v14  ;;  %692 = vmatprep.subr.bf16.mxu1 %v684_v14 }
 0x2a6   :  { %687 = vmatpush3.bf16.msra.mxu0 %v684_v14  ;;  %694 = vmatpush3.bf16.msra.mxu1 %v684_v14 }
 0x2a7   :  { %v688_v18 = vpack.c.bf16 %v414_v16, %v413_v17 }
 0x2a9   :  { %689 = vmatprep.subr.bf16.mxu0 %v688_v18  ;;  %693 = vmatprep.subr.bf16.mxu1 %v688_v18 }
 0x2aa   :  { %691 = vmatpush3.bf16.msra.mxu0 %v688_v18  ;;  %695 = vmatpush3.bf16.msra.mxu1 %v688_v18 }
 0x2ad   :  { %663 = vmatmul.mubr.msk.f32.vlgmr.msra.gmra.mrb[8].mxu0 %vm182_vm2, %v578_v19  ;;  %666 = vmatmul.mubr.msk.f32.vlgmr.msra.gmra.mrb[4].mxu1 %vm182_vm2, %v580_v20 }
 0x380   :  { %v664_v22 = vpop.f32.mrb[8].mxu0  ;;  %v667_v23 = vpop.f32.mrb[4].mxu1 }
 0x381   :  { %v520_v24 = vpop.f32.mrb[9].mxu0  ;;  %v529_v25 = vpop.f32.mrb[5].mxu1 }
 0x382   :  { %v521_v26 = vadd.f32 %v520_v24, %v428_v21 }
 0x384   :  { %537 = vst.msk [vmem:[#allocation2] sm:$0x3] %vm536_vm3, %v521_v26 }
 0x385   :  { %711 = shalt.err (!%p708_p4)
}
 0x386   :  { %s712_s22 = scalar_lea.hbm %s873_s4, 32 }
 0x387   :  { %p713_p5 = scmp.ne.s32.totalorder %s873_s4, %s712_s22  ;;  %p716_p6 = scmp.lt.u32.totalorder %s712_s22, %s873_s4 }
 0x389   :  { %p718_p7 = pnand %p716_p6, %p713_p5 }
 0x38b   :  { %721 = shalt.err (!%p718_p7)
}
 0x38c   :  { %547 = dma.vmem_to_hbm [thread:$0]  %s545_s19, 32, %s873_s4, [#allocation3]  }
 0x38d   :  { %722 = dma.done.wait [#allocation3], 32  }
 0x38e   :  { %723 = vsyncadd [#allocation3], 4294967264 }
 0x38f   :  { %551 = vsyncpa [#allocation3], 1 }

</bundles_post_ra>
